<compile_context>
chip_gen: v7x
topology: tpu7x:2x2x1
jax: 0.10.0
libtpu: 0.0.40
codegen_flags: <defaults>
</compile_context>

<pallas_src>
import functools

import jax
import jax.numpy as jnp
from jax import lax
from jax.experimental import pallas as pl
from jax.experimental.pallas import tpu as pltpu


def lstm_kernel(ids_ref, emb_ref, w_ih_ref, bias_ref, w_hh_ref,
                w_out_ref, b_out_ref, out_ref,
                *, seq_len, batch_pad, hidden, vocab_pad):
    """Whole-sequence LSTM forward for one (small, sublane-padded) batch tile.

    ids_ref   : (T*Bp, 1)  i32  time-major token ids (row = t*Bp + b; pad rows = 0)
    emb_ref   : (Vp, E)    f32  embedding table (rows >= V are zero padding)
    w_ih_ref  : (E, 4H)    f32  packed input->gate weights (torch order i,f,g,o)
    bias_ref  : (1, 4H)    f32  b_ih + b_hh combined
    w_hh_ref  : (H, 4H)    f32  packed hidden->gate weights
    w_out_ref : (1, H)     f32  output Linear weight row
    b_out_ref : (1, 1)     f32  output Linear bias
    out_ref   : (Bp, 128)  f32  sigmoid(logit) broadcast across lanes
    """
    T, Bp, H, Vp = seq_len, batch_pad, hidden, vocab_pad

    # --- In-kernel embedding gather (tiny vocab): one-hot matmul on the MXU.
    # TODO(synk): for realistic vocab sizes gather rows from an HBM-resident
    # table instead (scalar-prefetched ids + manual make_async_copy).
    ids = ids_ref[...]                                                  # (T*Bp, 1)
    tok_iota = lax.broadcasted_iota(jnp.int32, (T * Bp, Vp), 1)
    one_hot = (ids == tok_iota).astype(jnp.float32)                     # (T*Bp, Vp)
    x = jnp.dot(one_hot, emb_ref[...],
                preferred_element_type=jnp.float32)                     # (T*Bp, E)

    # --- Hoisted input projection + bias for every (t, b): one MXU matmul,
    # entirely off the recurrent critical path.
    # TODO(synk): at realistic T*B, chunk this over a time window into a
    # double-buffered VMEM scratch (pltpu.emit_pipeline) instead of
    # materializing (T*B, 4H) -- it would not fit v7x's 64 MiB VMEM.
    xp = jnp.dot(x, w_ih_ref[...],
                 preferred_element_type=jnp.float32) + bias_ref[...]    # (T*Bp, 4H)

    w_hh = w_hh_ref[...]                                                # (H, 4H)

    h = jnp.zeros((Bp, H), jnp.float32)
    c = jnp.zeros((Bp, H), jnp.float32)

    # --- Batch-vectorized recurrence, fully unrolled over static T.
    # Per step: one fused (Bp,H)@(H,4H) hidden matmul, one sigmoid + one tanh
    # over the full 128-lane pre-activation, four static lane slices (XLU) to
    # align gates, then the elementwise cell update. Each xp read is an
    # (8,128)-aligned tile thanks to the batch padding.
    # TODO(synk): for large T or H switch to lax.fori_loop(..., unroll=2..4) so
    # live ranges stay bounded (a full Python unroll would spill past 64 vregs).
    for t in range(T):
        gates = xp[t * Bp:(t + 1) * Bp, :] + jnp.dot(
            h, w_hh, preferred_element_type=jnp.float32)                # (Bp, 4H)
        sg = jax.nn.sigmoid(gates)
        tg = jnp.tanh(gates)
        i_g = sg[:, 0 * H:1 * H]
        f_g = sg[:, 1 * H:2 * H]
        g_g = tg[:, 2 * H:3 * H]
        o_g = sg[:, 3 * H:4 * H]
        c = f_g * c + i_g * g_g
        h = o_g * jnp.tanh(c)

    # --- Output head on the final hidden state: sigmoid(h_T @ w_out^T + b).
    # N=1 matmul done as a VPU multiply + lane reduction (no 1-lane MXU call).
    logit = jnp.sum(h * w_out_ref[...], axis=-1, keepdims=True) + b_out_ref[...]

    # Lane-dense unmasked (8,128) store; wrapper reads [:B, 0].
    out_ref[...] = jnp.broadcast_to(jax.nn.sigmoid(logit), out_ref.shape)


@jax.jit
def lstm_forward(tweet, params):
    """Embedding + LSTM + head in one Pallas call; only layout prep stays in JAX."""
    B, T = tweet.shape
    V, E = params["embedding"].shape
    H = params["w_hh_t"].shape[0]

    # out.view(B, -1)[:, -1] only equals sigmoid(h_T @ W^T + b) because the
    # output Linear has width 1 -- guard that assumption.
    assert params["w_out_row"].shape[0] == 1

    # Pad batch to a sublane multiple so per-step reads / the output store are
    # (8,128)-tile aligned; pad vocab to a lane multiple for the one-hot matmul.
    Bp = ((B + 7) // 8) * 8
    Vp = ((V + 127) // 128) * 128

    # Time-major, batch-padded ids; row = t*Bp + b. Pad rows use token 0 and
    # their output rows are discarded below.
    ids_tm = jnp.zeros((T, Bp), jnp.int32).at[:, :B].set(
        jnp.swapaxes(tweet, 0, 1).astype(jnp.int32))
    ids2d = ids_tm.reshape(T * Bp, 1)

    emb_pad = jnp.zeros((Vp, E), jnp.float32).at[:V].set(
        params["embedding"].astype(jnp.float32))

    kernel = functools.partial(lstm_kernel, seq_len=T, batch_pad=Bp,
                               hidden=H, vocab_pad=Vp)

    grid_spec = pltpu.PrefetchScalarGridSpec(
        num_scalar_prefetch=0,
        # TODO(synk): at realistic batch sizes tile Bp over a leading "parallel"
        # grid axis (>=128 rows/tile) so v7x's two TensorCores each take half
        # the batch; at Bp=8 the per-grid-step overhead would dominate.
        grid=(1,),
        in_specs=[
            pl.BlockSpec((T * Bp, 1), lambda i: (0, 0)),
            pl.BlockSpec((Vp, E), lambda i: (0, 0)),
            pl.BlockSpec((E, 4 * H), lambda i: (0, 0)),
            pl.BlockSpec((1, 4 * H), lambda i: (0, 0)),
            pl.BlockSpec((H, 4 * H), lambda i: (0, 0)),
            pl.BlockSpec((1, H), lambda i: (0, 0)),
            pl.BlockSpec((1, 1), lambda i: (0, 0)),
        ],
        out_specs=pl.BlockSpec((Bp, 128), lambda i: (0, 0)),
    )

    out = pl.pallas_call(
        kernel,
        out_shape=jax.ShapeDtypeStruct((Bp, 128), jnp.float32),
        grid_spec=grid_spec,
        compiler_params=pltpu.CompilerParams(
            dimension_semantics=("arbitrary",)),
    )(ids2d, emb_pad, params["w_ih_t"], params["bias"],
      params["w_hh_t"], params["w_out_row"], params["b_out"])

    # matches: out.view(B, -1)[:, -1]  (output Linear has width 1)
    return out[:B, 0]


def lstm_reference(tweet, params):
    """Pure-JAX reference of the PyTorch forward, for correctness checking."""
    embed = jnp.take(params["embedding"], tweet, axis=0).astype(jnp.float32)
    B, T, E = embed.shape
    H = params["w_hh_t"].shape[0]

    def cell(carry, x_t):
        h, c = carry
        gates = x_t @ params["w_ih_t"] + h @ params["w_hh_t"] + params["bias"][0]
        i = jax.nn.sigmoid(gates[:, 0 * H:1 * H])
        f = jax.nn.sigmoid(gates[:, 1 * H:2 * H])
        g = jnp.tanh(gates[:, 2 * H:3 * H])
        o = jax.nn.sigmoid(gates[:, 3 * H:4 * H])
        c = f * c + i * g
        h = o * jnp.tanh(c)
        return (h, c), None

    init = (jnp.zeros((B, H), jnp.float32), jnp.zeros((B, H), jnp.float32))
    (h_final, _), _ = lax.scan(cell, init, jnp.swapaxes(embed, 0, 1))
    logit = h_final @ params["w_out_row"].T + params["b_out"]          # (B, 1)
    return jax.nn.sigmoid(logit)[:, -1]


def init_params(key, vocab_size, embed_dim, hidden_dim):
    ks = jax.random.split(key, 6)
    k = 1.0 / jnp.sqrt(hidden_dim)
    u = lambda kk, shape: jax.random.uniform(kk, shape, jnp.float32, -k, k)
    return {
        "embedding": jax.random.normal(ks[0], (vocab_size, embed_dim), jnp.float32),
        "w_ih_t": u(ks[1], (embed_dim, 4 * hidden_dim)),   # transpose of weight_ih_l0
        "w_hh_t": u(ks[2], (hidden_dim, 4 * hidden_dim)),  # transpose of weight_hh_l0
        "bias": u(ks[3], (1, 4 * hidden_dim)),             # b_ih + b_hh combined
        "w_out_row": u(ks[4], (1, hidden_dim)),            # Linear(hidden, 1) weight
        "b_out": u(ks[5], (1, 1)),
    }


if __name__ == "__main__":
    EMBED_DIM = 16
    HIDDEN_DIM = 32
    VOCAB_SIZE = 50
    SEQ_LEN = 8
    BATCH = 2

    key = jax.random.PRNGKey(0)
    k_tok, k_par = jax.random.split(key)
    tweet = jax.random.randint(k_tok, (BATCH, SEQ_LEN), 0, VOCAB_SIZE, jnp.int32)
    params = init_params(k_par, VOCAB_SIZE, EMBED_DIM, HIDDEN_DIM)

    out = jax.block_until_ready(lstm_forward(tweet, params))
    ref = jax.block_until_ready(lstm_reference(tweet, params))

    assert out.shape == (BATCH,), out.shape
    assert jnp.allclose(out, ref, atol=1e-3, rtol=1e-3), (out, ref)
    print("KERNEL_OK")
</pallas_src>

<mosaic_0001>
module attributes {stable_mosaic.version = 11 : i64} {
  func.func @lstm_kernel(%arg0: i32, %arg1: memref<64x1xi32, #tpu.memory_space<vmem>>, %arg2: memref<128x16xf32, #tpu.memory_space<vmem>>, %arg3: memref<16x128xf32, #tpu.memory_space<vmem>>, %arg4: memref<1x128xf32, #tpu.memory_space<vmem>>, %arg5: memref<32x128xf32, #tpu.memory_space<vmem>>, %arg6: memref<1x32xf32, #tpu.memory_space<vmem>>, %arg7: memref<1x1xf32, #tpu.memory_space<vmem>>, %arg8: memref<8x128xf32, #tpu.memory_space<vmem>>) attributes {dimension_semantics = [#tpu.dimension_semantics<arbitrary>], iteration_bounds = array<i64: 1>, scalar_prefetch = 0 : i64, scratch_operands = 0 : i64, tpu.core_type = #tpu.core_type<tc>, window_params = [{pipeline_mode = #tpu.pipeline_mode<synchronous>, transform_indices = @transform_0, window_bounds = array<i64: 64, 1>}, {pipeline_mode = #tpu.pipeline_mode<synchronous>, transform_indices = @transform_1, window_bounds = array<i64: 128, 16>}, {pipeline_mode = #tpu.pipeline_mode<synchronous>, transform_indices = @transform_2, window_bounds = array<i64: 16, 128>}, {pipeline_mode = #tpu.pipeline_mode<synchronous>, transform_indices = @transform_3, window_bounds = array<i64: 1, 128>}, {pipeline_mode = #tpu.pipeline_mode<synchronous>, transform_indices = @transform_4, window_bounds = array<i64: 32, 128>}, {pipeline_mode = #tpu.pipeline_mode<synchronous>, transform_indices = @transform_5, window_bounds = array<i64: 1, 32>}, {pipeline_mode = #tpu.pipeline_mode<synchronous>, transform_indices = @transform_6, window_bounds = array<i64: 1, 1>}, {pipeline_mode = #tpu.pipeline_mode<synchronous>, transform_indices = @transform_7, window_bounds = array<i64: 8, 128>}]} {
    %c0 = arith.constant 0 : index
    %c0_0 = arith.constant 0 : index
    %0 = vector.load %arg1[%c0, %c0_0] : memref<64x1xi32, #tpu.memory_space<vmem>>, vector<64x1xi32>
    %1 = tpu.iota {dimensions = array<i32: 1>} : vector<64x128xi32>
    %2 = vector.broadcast %0 : vector<64x1xi32> to vector<64x128xi32>
    %3 = arith.cmpi eq, %2, %1 : vector<64x128xi32>
    %4 = arith.extui %3 : vector<64x128xi1> to vector<64x128xi32>
    %5 = arith.sitofp %4 : vector<64x128xi32> to vector<64x128xf32>
    %c0_1 = arith.constant 0 : index
    %c0_2 = arith.constant 0 : index
    %6 = vector.load %arg2[%c0_1, %c0_2] : memref<128x16xf32, #tpu.memory_space<vmem>>, vector<128x16xf32>
    %cst = arith.constant dense<0.000000e+00> : vector<64x16xf32>
    %7 = tpu.matmul %5, %6, %cst {dimension_numbers = #tpu.dot_dimension_numbers<[1], [0], [0], [1], [0, 0, 1, 1], [], []>} : vector<64x128xf32>, vector<128x16xf32>, vector<64x16xf32> -> vector<64x16xf32>
    %c0_3 = arith.constant 0 : index
    %c0_4 = arith.constant 0 : index
    %8 = vector.load %arg3[%c0_3, %c0_4] : memref<16x128xf32, #tpu.memory_space<vmem>>, vector<16x128xf32>
    %cst_5 = arith.constant dense<0.000000e+00> : vector<64x128xf32>
    %9 = tpu.matmul %7, %8, %cst_5 {dimension_numbers = #tpu.dot_dimension_numbers<[1], [0], [0], [1], [0, 0, 1, 1], [], []>} : vector<64x16xf32>, vector<16x128xf32>, vector<64x128xf32> -> vector<64x128xf32>
    %c0_6 = arith.constant 0 : index
    %c0_7 = arith.constant 0 : index
    %10 = vector.load %arg4[%c0_6, %c0_7] : memref<1x128xf32, #tpu.memory_space<vmem>>, vector<1x128xf32>
    %11 = vector.broadcast %10 : vector<1x128xf32> to vector<64x128xf32>
    %12 = arith.addf %9, %11 : vector<64x128xf32>
    %c0_8 = arith.constant 0 : index
    %c0_9 = arith.constant 0 : index
    %13 = vector.load %arg5[%c0_8, %c0_9] : memref<32x128xf32, #tpu.memory_space<vmem>>, vector<32x128xf32>
    %cst_10 = arith.constant 0.000000e+00 : f32
    %14 = vector.broadcast %cst_10 : f32 to vector<8x32xf32>
    %cst_11 = arith.constant 0.000000e+00 : f32
    %15 = vector.broadcast %cst_11 : f32 to vector<8x32xf32>
    %16 = vector.extract_strided_slice %12 {offsets = [0, 0], sizes = [8, 128], strides = [1, 1]} : vector<64x128xf32> to vector<8x128xf32>
    %cst_12 = arith.constant dense<0.000000e+00> : vector<8x128xf32>
    %17 = tpu.matmul %14, %13, %cst_12 {dimension_numbers = #tpu.dot_dimension_numbers<[1], [0], [0], [1], [0, 0, 1, 1], [], []>} : vector<8x32xf32>, vector<32x128xf32>, vector<8x128xf32> -> vector<8x128xf32>
    %18 = arith.addf %16, %17 : vector<8x128xf32>
    %19 = arith.negf %18 : vector<8x128xf32>
    %20 = math.exp %19 : vector<8x128xf32>
    %cst_13 = arith.constant 1.000000e+00 : f32
    %21 = vector.broadcast %cst_13 : f32 to vector<8x128xf32>
    %22 = arith.addf %21, %20 : vector<8x128xf32>
    %23 = arith.divf %21, %22 : vector<8x128xf32>
    %24 = math.tanh %18 : vector<8x128xf32>
    %25 = vector.extract_strided_slice %23 {offsets = [0, 0], sizes = [8, 32], strides = [1, 1]} : vector<8x128xf32> to vector<8x32xf32>
    %26 = vector.extract_strided_slice %23 {offsets = [0, 32], sizes = [8, 32], strides = [1, 1]} : vector<8x128xf32> to vector<8x32xf32>
    %27 = vector.extract_strided_slice %24 {offsets = [0, 64], sizes = [8, 32], strides = [1, 1]} : vector<8x128xf32> to vector<8x32xf32>
    %28 = vector.extract_strided_slice %23 {offsets = [0, 96], sizes = [8, 32], strides = [1, 1]} : vector<8x128xf32> to vector<8x32xf32>
    %29 = arith.mulf %26, %15 : vector<8x32xf32>
    %30 = arith.mulf %25, %27 : vector<8x32xf32>
    %31 = arith.addf %29, %30 : vector<8x32xf32>
    %32 = math.tanh %31 : vector<8x32xf32>
    %33 = arith.mulf %28, %32 : vector<8x32xf32>
    %34 = vector.extract_strided_slice %12 {offsets = [8, 0], sizes = [8, 128], strides = [1, 1]} : vector<64x128xf32> to vector<8x128xf32>
    %cst_14 = arith.constant dense<0.000000e+00> : vector<8x128xf32>
    %35 = tpu.matmul %33, %13, %cst_14 {dimension_numbers = #tpu.dot_dimension_numbers<[1], [0], [0], [1], [0, 0, 1, 1], [], []>} : vector<8x32xf32>, vector<32x128xf32>, vector<8x128xf32> -> vector<8x128xf32>
    %36 = arith.addf %34, %35 : vector<8x128xf32>
    %37 = arith.negf %36 : vector<8x128xf32>
    %38 = math.exp %37 : vector<8x128xf32>
    %cst_15 = arith.constant 1.000000e+00 : f32
    %39 = vector.broadcast %cst_15 : f32 to vector<8x128xf32>
    %40 = arith.addf %39, %38 : vector<8x128xf32>
    %41 = arith.divf %39, %40 : vector<8x128xf32>
    %42 = math.tanh %36 : vector<8x128xf32>
    %43 = vector.extract_strided_slice %41 {offsets = [0, 0], sizes = [8, 32], strides = [1, 1]} : vector<8x128xf32> to vector<8x32xf32>
    %44 = vector.extract_strided_slice %41 {offsets = [0, 32], sizes = [8, 32], strides = [1, 1]} : vector<8x128xf32> to vector<8x32xf32>
    %45 = vector.extract_strided_slice %42 {offsets = [0, 64], sizes = [8, 32], strides = [1, 1]} : vector<8x128xf32> to vector<8x32xf32>
    %46 = vector.extract_strided_slice %41 {offsets = [0, 96], sizes = [8, 32], strides = [1, 1]} : vector<8x128xf32> to vector<8x32xf32>
    %47 = arith.mulf %44, %31 : vector<8x32xf32>
    %48 = arith.mulf %43, %45 : vector<8x32xf32>
    %49 = arith.addf %47, %48 : vector<8x32xf32>
    %50 = math.tanh %49 : vector<8x32xf32>
    %51 = arith.mulf %46, %50 : vector<8x32xf32>
    %52 = vector.extract_strided_slice %12 {offsets = [16, 0], sizes = [8, 128], strides = [1, 1]} : vector<64x128xf32> to vector<8x128xf32>
    %cst_16 = arith.constant dense<0.000000e+00> : vector<8x128xf32>
    %53 = tpu.matmul %51, %13, %cst_16 {dimension_numbers = #tpu.dot_dimension_numbers<[1], [0], [0], [1], [0, 0, 1, 1], [], []>} : vector<8x32xf32>, vector<32x128xf32>, vector<8x128xf32> -> vector<8x128xf32>
    %54 = arith.addf %52, %53 : vector<8x128xf32>
    %55 = arith.negf %54 : vector<8x128xf32>
    %56 = math.exp %55 : vector<8x128xf32>
    %cst_17 = arith.constant 1.000000e+00 : f32
    %57 = vector.broadcast %cst_17 : f32 to vector<8x128xf32>
    %58 = arith.addf %57, %56 : vector<8x128xf32>
    %59 = arith.divf %57, %58 : vector<8x128xf32>
    %60 = math.tanh %54 : vector<8x128xf32>
    %61 = vector.extract_strided_slice %59 {offsets = [0, 0], sizes = [8, 32], strides = [1, 1]} : vector<8x128xf32> to vector<8x32xf32>
    %62 = vector.extract_strided_slice %59 {offsets = [0, 32], sizes = [8, 32], strides = [1, 1]} : vector<8x128xf32> to vector<8x32xf32>
    %63 = vector.extract_strided_slice %60 {offsets = [0, 64], sizes = [8, 32], strides = [1, 1]} : vector<8x128xf32> to vector<8x32xf32>
    %64 = vector.extract_strided_slice %59 {offsets = [0, 96], sizes = [8, 32], strides = [1, 1]} : vector<8x128xf32> to vector<8x32xf32>
    %65 = arith.mulf %62, %49 : vector<8x32xf32>
    %66 = arith.mulf %61, %63 : vector<8x32xf32>
    %67 = arith.addf %65, %66 : vector<8x32xf32>
    %68 = math.tanh %67 : vector<8x32xf32>
    %69 = arith.mulf %64, %68 : vector<8x32xf32>
    %70 = vector.extract_strided_slice %12 {offsets = [24, 0], sizes = [8, 128], strides = [1, 1]} : vector<64x128xf32> to vector<8x128xf32>
    %cst_18 = arith.constant dense<0.000000e+00> : vector<8x128xf32>
    %71 = tpu.matmul %69, %13, %cst_18 {dimension_numbers = #tpu.dot_dimension_numbers<[1], [0], [0], [1], [0, 0, 1, 1], [], []>} : vector<8x32xf32>, vector<32x128xf32>, vector<8x128xf32> -> vector<8x128xf32>
    %72 = arith.addf %70, %71 : vector<8x128xf32>
    %73 = arith.negf %72 : vector<8x128xf32>
    %74 = math.exp %73 : vector<8x128xf32>
    %cst_19 = arith.constant 1.000000e+00 : f32
    %75 = vector.broadcast %cst_19 : f32 to vector<8x128xf32>
    %76 = arith.addf %75, %74 : vector<8x128xf32>
    %77 = arith.divf %75, %76 : vector<8x128xf32>
    %78 = math.tanh %72 : vector<8x128xf32>
    %79 = vector.extract_strided_slice %77 {offsets = [0, 0], sizes = [8, 32], strides = [1, 1]} : vector<8x128xf32> to vector<8x32xf32>
    %80 = vector.extract_strided_slice %77 {offsets = [0, 32], sizes = [8, 32], strides = [1, 1]} : vector<8x128xf32> to vector<8x32xf32>
    %81 = vector.extract_strided_slice %78 {offsets = [0, 64], sizes = [8, 32], strides = [1, 1]} : vector<8x128xf32> to vector<8x32xf32>
    %82 = vector.extract_strided_slice %77 {offsets = [0, 96], sizes = [8, 32], strides = [1, 1]} : vector<8x128xf32> to vector<8x32xf32>
    %83 = arith.mulf %80, %67 : vector<8x32xf32>
    %84 = arith.mulf %79, %81 : vector<8x32xf32>
    %85 = arith.addf %83, %84 : vector<8x32xf32>
    %86 = math.tanh %85 : vector<8x32xf32>
    %87 = arith.mulf %82, %86 : vector<8x32xf32>
    %88 = vector.extract_strided_slice %12 {offsets = [32, 0], sizes = [8, 128], strides = [1, 1]} : vector<64x128xf32> to vector<8x128xf32>
    %cst_20 = arith.constant dense<0.000000e+00> : vector<8x128xf32>
    %89 = tpu.matmul %87, %13, %cst_20 {dimension_numbers = #tpu.dot_dimension_numbers<[1], [0], [0], [1], [0, 0, 1, 1], [], []>} : vector<8x32xf32>, vector<32x128xf32>, vector<8x128xf32> -> vector<8x128xf32>
    %90 = arith.addf %88, %89 : vector<8x128xf32>
    %91 = arith.negf %90 : vector<8x128xf32>
    %92 = math.exp %91 : vector<8x128xf32>
    %cst_21 = arith.constant 1.000000e+00 : f32
    %93 = vector.broadcast %cst_21 : f32 to vector<8x128xf32>
    %94 = arith.addf %93, %92 : vector<8x128xf32>
    %95 = arith.divf %93, %94 : vector<8x128xf32>
    %96 = math.tanh %90 : vector<8x128xf32>
    %97 = vector.extract_strided_slice %95 {offsets = [0, 0], sizes = [8, 32], strides = [1, 1]} : vector<8x128xf32> to vector<8x32xf32>
    %98 = vector.extract_strided_slice %95 {offsets = [0, 32], sizes = [8, 32], strides = [1, 1]} : vector<8x128xf32> to vector<8x32xf32>
    %99 = vector.extract_strided_slice %96 {offsets = [0, 64], sizes = [8, 32], strides = [1, 1]} : vector<8x128xf32> to vector<8x32xf32>
    %100 = vector.extract_strided_slice %95 {offsets = [0, 96], sizes = [8, 32], strides = [1, 1]} : vector<8x128xf32> to vector<8x32xf32>
    %101 = arith.mulf %98, %85 : vector<8x32xf32>
    %102 = arith.mulf %97, %99 : vector<8x32xf32>
    %103 = arith.addf %101, %102 : vector<8x32xf32>
    %104 = math.tanh %103 : vector<8x32xf32>
    %105 = arith.mulf %100, %104 : vector<8x32xf32>
    %106 = vector.extract_strided_slice %12 {offsets = [40, 0], sizes = [8, 128], strides = [1, 1]} : vector<64x128xf32> to vector<8x128xf32>
    %cst_22 = arith.constant dense<0.000000e+00> : vector<8x128xf32>
    %107 = tpu.matmul %105, %13, %cst_22 {dimension_numbers = #tpu.dot_dimension_numbers<[1], [0], [0], [1], [0, 0, 1, 1], [], []>} : vector<8x32xf32>, vector<32x128xf32>, vector<8x128xf32> -> vector<8x128xf32>
    %108 = arith.addf %106, %107 : vector<8x128xf32>
    %109 = arith.negf %108 : vector<8x128xf32>
    %110 = math.exp %109 : vector<8x128xf32>
    %cst_23 = arith.constant 1.000000e+00 : f32
    %111 = vector.broadcast %cst_23 : f32 to vector<8x128xf32>
    %112 = arith.addf %111, %110 : vector<8x128xf32>
    %113 = arith.divf %111, %112 : vector<8x128xf32>
    %114 = math.tanh %108 : vector<8x128xf32>
    %115 = vector.extract_strided_slice %113 {offsets = [0, 0], sizes = [8, 32], strides = [1, 1]} : vector<8x128xf32> to vector<8x32xf32>
    %116 = vector.extract_strided_slice %113 {offsets = [0, 32], sizes = [8, 32], strides = [1, 1]} : vector<8x128xf32> to vector<8x32xf32>
    %117 = vector.extract_strided_slice %114 {offsets = [0, 64], sizes = [8, 32], strides = [1, 1]} : vector<8x128xf32> to vector<8x32xf32>
    %118 = vector.extract_strided_slice %113 {offsets = [0, 96], sizes = [8, 32], strides = [1, 1]} : vector<8x128xf32> to vector<8x32xf32>
    %119 = arith.mulf %116, %103 : vector<8x32xf32>
    %120 = arith.mulf %115, %117 : vector<8x32xf32>
    %121 = arith.addf %119, %120 : vector<8x32xf32>
    %122 = math.tanh %121 : vector<8x32xf32>
    %123 = arith.mulf %118, %122 : vector<8x32xf32>
    %124 = vector.extract_strided_slice %12 {offsets = [48, 0], sizes = [8, 128], strides = [1, 1]} : vector<64x128xf32> to vector<8x128xf32>
    %cst_24 = arith.constant dense<0.000000e+00> : vector<8x128xf32>
    %125 = tpu.matmul %123, %13, %cst_24 {dimension_numbers = #tpu.dot_dimension_numbers<[1], [0], [0], [1], [0, 0, 1, 1], [], []>} : vector<8x32xf32>, vector<32x128xf32>, vector<8x128xf32> -> vector<8x128xf32>
    %126 = arith.addf %124, %125 : vector<8x128xf32>
    %127 = arith.negf %126 : vector<8x128xf32>
    %128 = math.exp %127 : vector<8x128xf32>
    %cst_25 = arith.constant 1.000000e+00 : f32
    %129 = vector.broadcast %cst_25 : f32 to vector<8x128xf32>
    %130 = arith.addf %129, %128 : vector<8x128xf32>
    %131 = arith.divf %129, %130 : vector<8x128xf32>
    %132 = math.tanh %126 : vector<8x128xf32>
    %133 = vector.extract_strided_slice %131 {offsets = [0, 0], sizes = [8, 32], strides = [1, 1]} : vector<8x128xf32> to vector<8x32xf32>
    %134 = vector.extract_strided_slice %131 {offsets = [0, 32], sizes = [8, 32], strides = [1, 1]} : vector<8x128xf32> to vector<8x32xf32>
    %135 = vector.extract_strided_slice %132 {offsets = [0, 64], sizes = [8, 32], strides = [1, 1]} : vector<8x128xf32> to vector<8x32xf32>
    %136 = vector.extract_strided_slice %131 {offsets = [0, 96], sizes = [8, 32], strides = [1, 1]} : vector<8x128xf32> to vector<8x32xf32>
    %137 = arith.mulf %134, %121 : vector<8x32xf32>
    %138 = arith.mulf %133, %135 : vector<8x32xf32>
    %139 = arith.addf %137, %138 : vector<8x32xf32>
    %140 = math.tanh %139 : vector<8x32xf32>
    %141 = arith.mulf %136, %140 : vector<8x32xf32>
    %142 = vector.extract_strided_slice %12 {offsets = [56, 0], sizes = [8, 128], strides = [1, 1]} : vector<64x128xf32> to vector<8x128xf32>
    %cst_26 = arith.constant dense<0.000000e+00> : vector<8x128xf32>
    %143 = tpu.matmul %141, %13, %cst_26 {dimension_numbers = #tpu.dot_dimension_numbers<[1], [0], [0], [1], [0, 0, 1, 1], [], []>} : vector<8x32xf32>, vector<32x128xf32>, vector<8x128xf32> -> vector<8x128xf32>
    %144 = arith.addf %142, %143 : vector<8x128xf32>
    %145 = arith.negf %144 : vector<8x128xf32>
    %146 = math.exp %145 : vector<8x128xf32>
    %cst_27 = arith.constant 1.000000e+00 : f32
    %147 = vector.broadcast %cst_27 : f32 to vector<8x128xf32>
    %148 = arith.addf %147, %146 : vector<8x128xf32>
    %149 = arith.divf %147, %148 : vector<8x128xf32>
    %150 = math.tanh %144 : vector<8x128xf32>
    %151 = vector.extract_strided_slice %149 {offsets = [0, 0], sizes = [8, 32], strides = [1, 1]} : vector<8x128xf32> to vector<8x32xf32>
    %152 = vector.extract_strided_slice %149 {offsets = [0, 32], sizes = [8, 32], strides = [1, 1]} : vector<8x128xf32> to vector<8x32xf32>
    %153 = vector.extract_strided_slice %150 {offsets = [0, 64], sizes = [8, 32], strides = [1, 1]} : vector<8x128xf32> to vector<8x32xf32>
    %154 = vector.extract_strided_slice %149 {offsets = [0, 96], sizes = [8, 32], strides = [1, 1]} : vector<8x128xf32> to vector<8x32xf32>
    %155 = arith.mulf %152, %139 : vector<8x32xf32>
    %156 = arith.mulf %151, %153 : vector<8x32xf32>
    %157 = arith.addf %155, %156 : vector<8x32xf32>
    %158 = math.tanh %157 : vector<8x32xf32>
    %159 = arith.mulf %154, %158 : vector<8x32xf32>
    %c0_28 = arith.constant 0 : index
    %c0_29 = arith.constant 0 : index
    %160 = vector.load %arg6[%c0_28, %c0_29] : memref<1x32xf32, #tpu.memory_space<vmem>>, vector<1x32xf32>
    %161 = vector.broadcast %160 : vector<1x32xf32> to vector<8x32xf32>
    %162 = arith.mulf %159, %161 : vector<8x32xf32>
    %cst_30 = arith.constant dense<0.000000e+00> : vector<8xf32>
    %163 = vector.multi_reduction <add>, %162, %cst_30 [1] : vector<8x32xf32> to vector<8xf32>
    %164 = vector.shape_cast %163 : vector<8xf32> to vector<8x1xf32>
    %c0_31 = arith.constant 0 : index
    %c0_32 = arith.constant 0 : index
    %165 = vector.load %arg7[%c0_31, %c0_32] : memref<1x1xf32, #tpu.memory_space<vmem>>, vector<1x1xf32>
    %166 = vector.broadcast %165 : vector<1x1xf32> to vector<8x1xf32>
    %167 = arith.addf %164, %166 : vector<8x1xf32>
    %168 = arith.negf %167 : vector<8x1xf32>
    %169 = math.exp %168 : vector<8x1xf32>
    %cst_33 = arith.constant 1.000000e+00 : f32
    %170 = vector.broadcast %cst_33 : f32 to vector<8x1xf32>
    %171 = arith.addf %170, %169 : vector<8x1xf32>
    %172 = arith.divf %170, %171 : vector<8x1xf32>
    %173 = vector.shape_cast %172 : vector<8x1xf32> to vector<8x1xf32>
    %174 = vector.broadcast %173 : vector<8x1xf32> to vector<8x128xf32>
    %c0_34 = arith.constant 0 : index
    %c0_35 = arith.constant 0 : index
    %175 = vector.load %arg8[%c0_34, %c0_35] : memref<8x128xf32, #tpu.memory_space<vmem>>, vector<8x128xf32>
    tpu.vector_store %arg8[%c0_34, %c0_35], %174 {strides = array<i32>} : memref<8x128xf32, #tpu.memory_space<vmem>>, vector<8x128xf32>,
    return
  }
  func.func @transform_0(%arg0: i32) -> (i32, i32) {
    %c0_i32 = arith.constant 0 : i32
    %c0_i32_0 = arith.constant 0 : i32
    %c0_i32_1 = arith.constant 0 : i32
    return %c0_i32, %c0_i32_0 : i32, i32
  }
  func.func @transform_1(%arg0: i32) -> (i32, i32) {
    %c0_i32 = arith.constant 0 : i32
    %c0_i32_0 = arith.constant 0 : i32
    %c0_i32_1 = arith.constant 0 : i32
    return %c0_i32, %c0_i32_0 : i32, i32
  }
  func.func @transform_2(%arg0: i32) -> (i32, i32) {
    %c0_i32 = arith.constant 0 : i32
    %c0_i32_0 = arith.constant 0 : i32
    %c0_i32_1 = arith.constant 0 : i32
    return %c0_i32, %c0_i32_0 : i32, i32
  }
  func.func @transform_3(%arg0: i32) -> (i32, i32) {
    %c0_i32 = arith.constant 0 : i32
    %c0_i32_0 = arith.constant 0 : i32
    %c0_i32_1 = arith.constant 0 : i32
    return %c0_i32, %c0_i32_0 : i32, i32
  }
  func.func @transform_4(%arg0: i32) -> (i32, i32) {
    %c0_i32 = arith.constant 0 : i32
    %c0_i32_0 = arith.constant 0 : i32
    %c0_i32_1 = arith.constant 0 : i32
    return %c0_i32, %c0_i32_0 : i32, i32
  }
  func.func @transform_5(%arg0: i32) -> (i32, i32) {
    %c0_i32 = arith.constant 0 : i32
    %c0_i32_0 = arith.constant 0 : i32
    %c0_i32_1 = arith.constant 0 : i32
    return %c0_i32, %c0_i32_0 : i32, i32
  }
  func.func @transform_6(%arg0: i32) -> (i32, i32) {
    %c0_i32 = arith.constant 0 : i32
    %c0_i32_0 = arith.constant 0 : i32
    %c0_i32_1 = arith.constant 0 : i32
    return %c0_i32, %c0_i32_0 : i32, i32
  }
  func.func @transform_7(%arg0: i32) -> (i32, i32) {
    %c0_i32 = arith.constant 0 : i32
    %c0_i32_0 = arith.constant 0 : i32
    %c0_i32_1 = arith.constant 0 : i32
    return %c0_i32, %c0_i32_0 : i32, i32
  }
}

</mosaic_0001>

<bundles_post_ra>
// kernel: lstm_forward.1
= control target key start
LH: loop header
LB: loop body
LE: loop exit
PB: predicated region body
PF: predicated region fallthrough
CT: control target
= control target key end

     0   :  { %v1617_v0 = vmov 0   ;;  %v36_v36 = vlaneseq  ;;  %v1618_v40 = vmov 1.0   ;;  %v1619_v47 = vmov 0.0|0.0   ;;  %s1623_s13 = smov 32   ;;  %s1886_s0 = inlined_call_operand.vmem [shape: s32[64,1], index: 0, kind: input, shape index: {}]   ;;  %s1887_s1 = inlined_call_operand.vmem [shape: f32[128,16], index: 1, kind: input, shape index: {}]   ;;  %s1888_s2 = inlined_call_operand.vmem [shape: f32[16,128], index: 2, kind: input, shape index: {}]   ;;  %s1889_s4 = inlined_call_operand.vmem [shape: f32[32,128], index: 4, kind: input, shape index: {}]   ;;  %s1890_s3 = inlined_call_operand.vmem [shape: f32[1,128], index: 3, kind: input, shape index: {}]   ;;  %s1891_s5 = inlined_call_operand.vmem [shape: f32[1,32], index: 5, kind: input, shape index: {}]   ;;  %s1892_s6 = inlined_call_operand.<no memory space> [shape: f32[1,1], index: 6, kind: input, shape index: {}]   ;;  %s1893_s7 = inlined_call_operand.vmem [shape: f32[8,128], index: 7, kind: output, shape index: {}]  }
   0x1   :  { %1548 = vset.pattern.permute.xlu1 %v1617_v0  ;;  %1547 = vset.pattern.permute.xlu0 %v1617_v0  ;;  %v30_v1 = vld [vmem:[%s1886_s0 + $0x10] sm:$0xff]  ;;  %v28_v2 = vld [vmem:[%s1886_s0] sm:$0xff]  ;;  %v31_v3 = vld [vmem:[%s1886_s0 + $0x18] sm:$0xff]  ;;  %vm1620_vm8 = vmmov 0   ;;  %v1621_v54 = vmov 0.0   ;;  %vm216_vm9 = vcmask 130048  }
   0x2   :  { %45 = vperm.xlu1 %1548, %v30_v1   ;;  %39 = vperm.xlu0 %1547, %v28_v2   ;;  %v29_v4 = vld [vmem:[%s1886_s0 + $0x8] sm:$0xff]  ;;  %v86_v5 = vld [vmem:[%s1887_s1] sm:$0xff]  ;;  %v88_v7 = vld [vmem:[%s1887_s1 + $0x10] sm:$0xff]  ;;  %v37_v37 = vand.u32 127, %v36_v36  ;;  %vm350_vm10 = vcmask 261120  }
   0x3   :  { %v87_v6 = vld [vmem:[%s1887_s1 + $0x8] sm:$0xff]  ;;  %v89_v8 = vld [vmem:[%s1887_s1 + $0x18] sm:$0xff]  ;;  %v90_v11 = vld [vmem:[%s1887_s1 + $0x20] sm:$0xff] }
   0x4   :  { %v1455_v9 = vpack.c.bf16 %v87_v6, %v86_v5  ;;  %v1459_v10 = vpack.c.bf16 %v89_v8, %v88_v7  ;;  %v91_v12 = vld [vmem:[%s1887_s1 + $0x28] sm:$0xff]  ;;  %v32_v14 = vld [vmem:[%s1886_s0 + $0x20] sm:$0xff]  ;;  %v92_v16 = vld [vmem:[%s1887_s1 + $0x30] sm:$0xff] }
   0x5   :  { %v33_v13 = vld [vmem:[%s1886_s0 + $0x28] sm:$0xff]  ;;  %v1463_v15 = vpack.c.bf16 %v91_v12, %v90_v11  ;;  %v93_v17 = vld [vmem:[%s1887_s1 + $0x38] sm:$0xff]  ;;  %v34_v19 = vld [vmem:[%s1886_s0 + $0x30] sm:$0xff] }
   0x6   :  { %48 = vperm.xlu1 %1548, %v31_v3   ;;  %42 = vperm.xlu0 %1547, %v29_v4   ;;  %v35_v18 = vld [vmem:[%s1886_s0 + $0x38] sm:$0xff]  ;;  %v1467_v20 = vpack.c.bf16 %v93_v17, %v92_v16  ;;  %v94_v21 = vld [vmem:[%s1887_s1 + $0x40] sm:$0xff]  ;;  %v95_v22 = vld [vmem:[%s1887_s1 + $0x48] sm:$0xff]  ;;  %s1624_s0 = smov 96  }
   0x7   :  { %1456 = vmatprep.subr.bf16.mxu0 %v1455_v9  ;;  %v1471_v23 = vpack.c.bf16 %v95_v22, %v94_v21  ;;  %v96_v24 = vld [vmem:[%s1887_s1 + $0x50] sm:$0xff]  ;;  %v97_v25 = vld [vmem:[%s1887_s1 + $0x58] sm:$0xff]  ;;  %v207_v26 = vld [vmem:[%s1888_s2] sm:$0xff] }
   0x8   :  { %1458 = vmatpush3.bf16.msra.mxu0 %v1455_v9  ;;  %v208_v27 = vld [vmem:[%s1888_s2 + $0x8] sm:$0xff]  ;;  %v1475_v28 = vpack.c.bf16 %v97_v25, %v96_v24  ;;  %v98_v30 = vld [vmem:[%s1887_s1 + $0x60] sm:$0xff]  ;;  %v100_v33 = vld [vmem:[%s1887_s1 + $0x70] sm:$0xff] }
   0x9   :  { %1460 = vmatprep.subr.bf16.mxu0 %v1459_v10  ;;  %v1487_v29 = vpack.c.bf16 %v208_v27, %v207_v26  ;;  %v99_v31 = vld [vmem:[%s1887_s1 + $0x68] sm:$0xff]  ;;  %v101_v34 = vld [vmem:[%s1887_s1 + $0x78] sm:$0xff]  ;;  %v346_v48 = vld [vmem:[%s1889_s4] sm:$0xff] }
   0xa   :  { %54 = vperm.xlu1 %1548, %v33_v13   ;;  %51 = vperm.xlu0 %1547, %v32_v14   ;;  %v1479_v32 = vpack.c.bf16 %v99_v31, %v98_v30  ;;  %v1483_v35 = vpack.c.bf16 %v101_v34, %v100_v33  ;;  %v347_v49 = vld [vmem:[%s1889_s4 + $0x8] sm:$0xff]  ;;  %v348_v51 = vld [vmem:[%s1889_s4 + $0x10] sm:$0xff]  ;;  %v349_v52 = vld [vmem:[%s1889_s4 + $0x18] sm:$0xff] }
   0xb   :  { %1488 = vmatprep.subr.bf16.mxu1 %v1487_v29  ;;  %v1751_v50 = vpack.c.bf16 %v347_v49, %v346_v48  ;;  %v1761_v53 = vpack.c.bf16 %v349_v52, %v348_v51  ;;  %v1206_v63 = vld [vmem:[%s1890_s3] ss:$0 sm:$0xff]  ;;  %s1622_s3 = smov 64  }
   0xc   :  { %1462 = vmatpush3.bf16.msra.mxu0 %v1459_v10  ;;  %1490 = vmatpush3.bf16.msra.mxu1 %v1487_v29 }
   0xd   :  { %1464 = vmatprep.subr.bf16.mxu0 %v1463_v15  ;;  %1491 = vmatprep.subr.bf16.mxu1 %v1619_v47 }
   0xe   :  { %60 = vperm.xlu1 %1548, %v35_v18   ;;  %57 = vperm.xlu0 %1547, %v34_v19  }
  0x10   :  { %1466 = vmatpush3.bf16.msra.mxu0 %v1463_v15 }
  0x11   :  { %1468 = vmatprep.subr.bf16.mxu0 %v1467_v20 }
  0x14   :  { %1470 = vmatpush3.bf16.msra.mxu0 %v1467_v20 }
  0x15   :  { %1472 = vmatprep.subr.bf16.mxu0 %v1471_v23 }
  0x18   :  { %1474 = vmatpush3.bf16.msra.mxu0 %v1471_v23 }
  0x19   :  { %1476 = vmatprep.subr.bf16.mxu0 %v1475_v28 }
  0x1c   :  { %1478 = vmatpush3.bf16.msra.mxu0 %v1475_v28 }
  0x1d   :  { %1480 = vmatprep.subr.bf16.mxu0 %v1479_v32 }
  0x20   :  { %1482 = vmatpush3.bf16.msra.mxu0 %v1479_v32 }
  0x21   :  { %1484 = vmatprep.subr.bf16.mxu0 %v1483_v35 }
  0x24   :  { %1486 = vmatpush3.bf16.msra.mxu0 %v1483_v35 }
  0x25   :  { %1515 = vmatprep.subr.bf16.mxu0 %v1619_v47 }
  0x81   :  { %v46_v38 = vpop.permute.xlu1 %45  ;;  %v40_v39 = vpop.permute.xlu0 %39 }
  0x82   :  { %vm62_vm0 = vcmp.eq.s32.totalorder %v40_v39, %v37_v37  ;;  %vm64_vm1 = vcmp.eq.s32.totalorder %v46_v38, %v37_v37 }
  0x83   :  { %1339 = vmatprep.mubr.msk.f32.mxu0 %vm62_vm0, %v1618_v40 }
  0x85   :  { %v49_v41 = vpop.permute.xlu1 %48  ;;  %v43_v42 = vpop.permute.xlu0 %42 }
  0x86   :  { %vm63_vm2 = vcmp.eq.s32.totalorder %v43_v42, %v37_v37  ;;  %vm65_vm3 = vcmp.eq.s32.totalorder %v49_v41, %v37_v37 }
  0x87   :  { %1340 = vmatmul.mubr.msk.f32.vlgmr.msra.gmra.mrb[0].mxu0 %vm63_vm2, %v1618_v40 }
  0x88   :  { %1342 = vmatprep.mubr.msk.f32.mxu0 %vm64_vm1, %v1618_v40  ;;  %1517 = vmatpush3.bf16.msra.mxu0 %v1751_v50 }
  0x89   :  { %v55_v43 = vpop.permute.xlu1 %54  ;;  %v52_v44 = vpop.permute.xlu0 %51  ;;  %1518 = vmatprep.subr.bf16.mxu0 %v1619_v47 }
  0x8a   :  { %vm66_vm4 = vcmp.eq.s32.totalorder %v52_v44, %v37_v37  ;;  %vm67_vm5 = vcmp.eq.s32.totalorder %v55_v43, %v37_v37 }
  0x8b   :  { %1343 = vmatmul.mubr.msk.f32.gmra.mrb[2].mxu0 %vm65_vm3, %v1618_v40 }
  0x8c   :  { %1345 = vmatprep.mubr.msk.f32.mxu0 %vm66_vm4, %v1618_v40  ;;  %1520 = vmatpush3.bf16.msra.mxu0 %v1761_v53 }
  0x8d   :  { %v58_v45 = vpop.permute.xlu0 %57  ;;  %v61_v46 = vpop.permute.xlu1 %60  ;;  %1527 = vmatprep.subr.bf16.mxu0 %v1619_v47 }
  0x8e   :  { %vm68_vm6 = vcmp.eq.s32.totalorder %v58_v45, %v37_v37  ;;  %vm69_vm7 = vcmp.eq.s32.totalorder %v61_v46, %v37_v37 }
  0x8f   :  { %1346 = vmatmul.mubr.msk.f32.gmra.mrb[4].mxu0 %vm67_vm5, %v1618_v40 }
  0x90   :  { %1348 = vmatprep.mubr.msk.f32.mxu0 %vm68_vm6, %v1618_v40 }
  0x93   :  { %1349 = vmatmul.mubr.msk.f32.gmra.mrb[6].mxu0 %vm69_vm7, %v1618_v40 }
  0x94   :  { %1419 = vmatprep.mubr.msk.f32.mxu0 %vm1620_vm8, %v1621_v54 }
 0x15a   :  { %v1341_v55 = vpop.f32.mrb[0].mxu0 }
 0x15b   :  { %v168_v56 = vpop.f32.mrb[1].mxu0 }
 0x15c   :  { %1355 = vmatprep.mubr.msk.f32.mxu1 %vm216_vm9, %v168_v56 }
 0x15d   :  { %1356 = vmatmul.mubr.msk.f32.vlgmr.msra.gmra.mrb[0].mxu1 %vm216_vm9, %v1341_v55 }
 0x15e   :  { %1493 = vmatpush3.bf16.msra.mxu1 %v1751_v50  ;;  %v1344_v57 = vpop.f32.mrb[2].mxu0 }
 0x15f   :  { %v178_v58 = vpop.f32.mrb[3].mxu0  ;;  %1494 = vmatprep.subr.bf16.mxu1 %v1619_v47 }
 0x160   :  { %1358 = vmatprep.mubr.msk.f32.mxu1 %vm216_vm9, %v178_v58 }
 0x161   :  { %1359 = vmatmul.mubr.msk.f32.gmra.mrb[2].mxu1 %vm216_vm9, %v1344_v57 }
 0x162   :  { %v1347_v59 = vpop.f32.mrb[4].mxu0  ;;  %1496 = vmatpush3.bf16.msra.mxu1 %v1761_v53 }
 0x163   :  { %v188_v60 = vpop.f32.mrb[5].mxu0  ;;  %1497 = vmatprep.subr.bf16.mxu1 %v1619_v47 }
 0x164   :  { %1361 = vmatprep.mubr.msk.f32.mxu1 %vm216_vm9, %v188_v60 }
 0x165   :  { %1362 = vmatmul.mubr.msk.f32.gmra.mrb[4].mxu1 %vm216_vm9, %v1347_v59 }
 0x166   :  { %v1350_v61 = vpop.f32.mrb[6].mxu0 }
 0x167   :  { %v198_v62 = vpop.f32.mrb[7].mxu0 }
 0x168   :  { %1364 = vmatprep.mubr.msk.f32.mxu1 %vm216_vm9, %v198_v62 }
 0x169   :  { %1365 = vmatmul.mubr.msk.f32.gmra.mrb[6].mxu1 %vm216_vm9, %v1350_v61 }
 0x16a   :  { %1375 = vmatprep.mubr.msk.f32.mxu1 %vm1620_vm8, %v1621_v54 }
 0x16d   :  { %1376 = vmatmul.mubr.f32.vlgmr.msra.gmra.mrb[8].mxu1 %v1621_v54 }
 0x16e   :  { %1499 = vmatpush3.bf16.msra.mxu1 %v1751_v50  ;;  %1386 = vmatprep.mubr.msk.f32.mxu1 %vm1620_vm8, %v1621_v54 }
 0x16f   :  { %1500 = vmatprep.subr.bf16.mxu1 %v1619_v47 }
 0x172   :  { %1502 = vmatpush3.bf16.msra.mxu1 %v1761_v53 }
 0x173   :  { %1503 = vmatprep.subr.bf16.mxu1 %v1619_v47 }
 0x230   :  { %v1357_v0 = vpop.f32.mrb[0].mxu1 }
 0x231   :  { %v313_v1 = vadd.f32 %v1357_v0, %v1206_v63  ;;  %v307_v2 = vpop.f32.mrb[1].mxu1 }
 0x232   :  { %v308_v15 = vadd.f32 %v1206_v63, %v307_v2 }
 0x234   :  { %v1360_v3 = vpop.f32.mrb[2].mxu1 }
 0x235   :  { %v1791_v4 = vadd.f32 %v1360_v3, %v1206_v63  ;;  %v317_v5 = vpop.f32.mrb[3].mxu1 }
 0x236   :  { %v1793_v6 = vadd.f32 %v1206_v63, %v317_v5 }
 0x238   :  { %v1363_v7 = vpop.f32.mrb[4].mxu1 }
 0x239   :  { %v1795_v8 = vadd.f32 %v1363_v7, %v1206_v63  ;;  %v327_v9 = vpop.f32.mrb[5].mxu1 }
 0x23a   :  { %v1797_v10 = vadd.f32 %v1206_v63, %v327_v9 }
 0x23c   :  { %v1366_v11 = vpop.f32.mrb[6].mxu1 }
 0x23d   :  { %v1799_v12 = vadd.f32 %v1366_v11, %v1206_v63  ;;  %v337_v13 = vpop.f32.mrb[7].mxu1 }
 0x23e   :  { %v1801_v14 = vadd.f32 %v1206_v63, %v337_v13 }
 0x240   :  { %v420_v16 = vpop.f32.mrb[8].mxu1 }
 0x241   :  { %v424_v17 = vadd.f32 %v420_v16, %v308_v15  ;;  %v1377_v18 = vpop.f32.mrb[9].mxu1 }
 0x243   :  { %1549 = vtanh.f32 %v424_v17  ;;  %v1215_v20 = vmul.f32 -1.442695, %v424_v17 }
 0x245   :  { %1551 = vpow2.f32 %v1215_v20 }
 0x24d   :  { %v1550_v19 = vpop.eup %1549 }
 0x24e   :  { %434 = vrot.lane.b32.xlu0 %v1550_v19, %s1622_s3 }
 0x24f   :  { %v1552_v21 = vpop.eup %1551 }
 0x250   :  { %v428_v22 = vadd.f32 1.0, %v1552_v21 }
 0x252   :  { %1553 = vrcp.f32 %v428_v22 }
 0x25c   :  { %v1554_v23 = vpop.eup %1553 }
 0x25d   :  { %v432_v26 = vmul.f32 0.0, %v1554_v23 }
 0x2c0   :  { %v435_v24 = vpop.permute.xlu0 %434 }
 0x2c1   :  { %v437_v25 = vmul.f32 %v1554_v23, %v435_v24 }
 0x2c3   :  { %439 = vrot.lane.b32.xlu1 %v437_v25, %s1623_s13 }
 0x335   :  { %v440_v27 = vpop.permute.xlu1 %439 }
 0x336   :  { %v442_v28 = vadd.f32 %v440_v27, %v432_v26 }
 0x338   :  { %1555 = vtanh.f32 %v442_v28 }
 0x342   :  { %v1556_v29 = vpop.eup %1555 }
 0x343   :  { %445 = vrot.lane.b32.xlu0 %v1556_v29, %s1622_s3 }
 0x3b5   :  { %v446_v30 = vpop.permute.xlu0 %445 }
 0x3b6   :  { %v448_v31 = vmul.f32 %v1554_v23, %v446_v30 }
 0x3b8   :  { %450 = vrot.lane.b32.xlu1 %v448_v31, %s1623_s13 }
 0x42a   :  { %v451_v32 = vpop.permute.xlu1 %450 }
 0x42b   :  { %1387 = vmatmul.mubr.msk.f32.vlgmr.msra.gmra.mrb[10].mxu1 %vm350_vm10, %v451_v32 }
 0x42c   :  { %1505 = vmatpush3.bf16.msra.mxu1 %v1751_v50  ;;  %1397 = vmatprep.mubr.msk.f32.mxu1 %vm1620_vm8, %v1621_v54 }
 0x42d   :  { %1506 = vmatprep.subr.bf16.mxu1 %v1619_v47 }
 0x430   :  { %1508 = vmatpush3.bf16.msra.mxu1 %v1761_v53 }
 0x431   :  { %1509 = vmatprep.subr.bf16.mxu1 %v1619_v47 }
 0x4fe   :  { %v520_v33 = vpop.f32.mrb[10].mxu1 }
 0x4ff   :  { %v524_v34 = vadd.f32 %v520_v33, %v313_v1  ;;  %v1388_v35 = vpop.f32.mrb[11].mxu1 }
 0x501   :  { %1557 = vtanh.f32 %v524_v34  ;;  %v1217_v37 = vmul.f32 -1.442695, %v524_v34 }
 0x503   :  { %1559 = vpow2.f32 %v1217_v37 }
 0x50b   :  { %v1558_v36 = vpop.eup %1557 }
 0x50c   :  { %534 = vrot.lane.b32.xlu0 %v1558_v36, %s1622_s3 }
 0x50d   :  { %v1560_v38 = vpop.eup %1559 }
 0x50e   :  { %v528_v39 = vadd.f32 1.0, %v1560_v38 }
 0x510   :  { %1561 = vrcp.f32 %v528_v39 }
 0x51a   :  { %v1562_v40 = vpop.eup %1561 }
 0x51b   :  { %v532_v43 = vmul.f32 %v1562_v40, %v442_v28 }
 0x57e   :  { %v535_v41 = vpop.permute.xlu0 %534 }
 0x57f   :  { %v537_v42 = vmul.f32 %v1562_v40, %v535_v41 }
 0x581   :  { %539 = vrot.lane.b32.xlu1 %v537_v42, %s1623_s13 }
 0x5f3   :  { %v540_v44 = vpop.permute.xlu1 %539 }
 0x5f4   :  { %v542_v45 = vadd.f32 %v540_v44, %v532_v43 }
 0x5f6   :  { %1563 = vtanh.f32 %v542_v45 }
 0x600   :  { %v1564_v46 = vpop.eup %1563 }
 0x601   :  { %545 = vrot.lane.b32.xlu0 %v1564_v46, %s1622_s3 }
 0x673   :  { %v546_v48 = vpop.permute.xlu0 %545 }
 0x674   :  { %v548_v49 = vmul.f32 %v1562_v40, %v546_v48 }
 0x676   :  { %550 = vrot.lane.b32.xlu1 %v548_v49, %s1623_s13 }
 0x6e8   :  { %v551_v51 = vpop.permute.xlu1 %550 }
 0x6e9   :  { %1398 = vmatmul.mubr.msk.f32.vlgmr.msra.gmra.mrb[12].mxu1 %vm350_vm10, %v551_v51 }
 0x6ea   :  { %1511 = vmatpush3.bf16.msra.mxu1 %v1751_v50  ;;  %1408 = vmatprep.mubr.msk.f32.mxu1 %vm1620_vm8, %v1621_v54 }
 0x6eb   :  { %1512 = vmatprep.subr.bf16.mxu1 %v1619_v47 }
 0x6ee   :  { %1514 = vmatpush3.bf16.msra.mxu1 %v1761_v53 }
 0x6ef   :  { %1521 = vmatprep.subr.bf16.mxu1 %v1619_v47 }
 0x7bc   :  { %v620_v52 = vpop.f32.mrb[12].mxu1 }
 0x7bd   :  { %v624_v55 = vadd.f32 %v620_v52, %v1793_v6  ;;  %v1399_v56 = vpop.f32.mrb[13].mxu1 }
 0x7bf   :  { %1565 = vtanh.f32 %v624_v55  ;;  %v1219_v58 = vmul.f32 -1.442695, %v624_v55 }
 0x7c1   :  { %1567 = vpow2.f32 %v1219_v58 }
 0x7c9   :  { %v1566_v57 = vpop.eup %1565 }
 0x7ca   :  { %634 = vrot.lane.b32.xlu0 %v1566_v57, %s1622_s3 }
 0x7cb   :  { %v1568_v59 = vpop.eup %1567 }
 0x7cc   :  { %v628_v60 = vadd.f32 1.0, %v1568_v59 }
 0x7ce   :  { %1569 = vrcp.f32 %v628_v60 }
 0x7d8   :  { %v1570_v61 = vpop.eup %1569 }
 0x7d9   :  { %v632_v0 = vmul.f32 %v1570_v61, %v542_v45 }
 0x83c   :  { %v635_v62 = vpop.permute.xlu0 %634 }
 0x83d   :  { %v637_v63 = vmul.f32 %v1570_v61, %v635_v62 }
 0x83f   :  { %639 = vrot.lane.b32.xlu1 %v637_v63, %s1623_s13 }
 0x8b1   :  { %v640_v1 = vpop.permute.xlu1 %639 }
 0x8b2   :  { %v642_v2 = vadd.f32 %v640_v1, %v632_v0 }
 0x8b4   :  { %1571 = vtanh.f32 %v642_v2 }
 0x8be   :  { %v1572_v3 = vpop.eup %1571 }
 0x8bf   :  { %645 = vrot.lane.b32.xlu0 %v1572_v3, %s1622_s3 }
 0x931   :  { %v646_v5 = vpop.permute.xlu0 %645 }
 0x932   :  { %v648_v6 = vmul.f32 %v1570_v61, %v646_v5 }
 0x934   :  { %650 = vrot.lane.b32.xlu1 %v648_v6, %s1623_s13 }
 0x9a6   :  { %v651_v7 = vpop.permute.xlu1 %650 }
 0x9a7   :  { %1409 = vmatmul.mubr.msk.f32.vlgmr.msra.gmra.mrb[14].mxu1 %vm350_vm10, %v651_v7 }
 0x9a8   :  { %1523 = vmatpush3.bf16.msra.mxu1 %v1751_v50  ;;  %1430 = vmatprep.mubr.msk.f32.mxu1 %vm1620_vm8, %v1621_v54 }
 0x9a9   :  { %1524 = vmatprep.subr.bf16.mxu1 %v1619_v47 }
 0x9ac   :  { %1526 = vmatpush3.bf16.msra.mxu1 %v1761_v53 }
 0x9ad   :  { %1533 = vmatprep.subr.bf16.mxu1 %v1619_v47 }
 0xa7a   :  { %v720_v9 = vpop.f32.mrb[14].mxu1 }
 0xa7b   :  { %v724_v11 = vadd.f32 %v720_v9, %v1791_v4  ;;  %v1410_v13 = vpop.f32.mrb[15].mxu1 }
 0xa7d   :  { %1573 = vtanh.f32 %v724_v11  ;;  %v1221_v16 = vmul.f32 -1.442695, %v724_v11 }
 0xa7f   :  { %1575 = vpow2.f32 %v1221_v16 }
 0xa87   :  { %v1574_v15 = vpop.eup %1573 }
 0xa88   :  { %734 = vrot.lane.b32.xlu0 %v1574_v15, %s1622_s3 }
 0xa89   :  { %v1576_v17 = vpop.eup %1575 }
 0xa8a   :  { %v728_v18 = vadd.f32 1.0, %v1576_v17 }
 0xa8c   :  { %1577 = vrcp.f32 %v728_v18 }
 0xa96   :  { %v1578_v19 = vpop.eup %1577 }
 0xa97   :  { %v732_v22 = vmul.f32 %v1578_v19, %v642_v2 }
 0xafa   :  { %v735_v20 = vpop.permute.xlu0 %734 }
 0xafb   :  { %v737_v21 = vmul.f32 %v1578_v19, %v735_v20 }
 0xafd   :  { %739 = vrot.lane.b32.xlu1 %v737_v21, %s1623_s13 }
 0xb6f   :  { %v740_v23 = vpop.permute.xlu1 %739 }
 0xb70   :  { %v742_v24 = vadd.f32 %v740_v23, %v732_v22 }
 0xb72   :  { %1579 = vtanh.f32 %v742_v24 }
 0xb7c   :  { %v1580_v4 = vpop.eup %1579 }
 0xb7d   :  { %745 = vrot.lane.b32.xlu0 %v1580_v4, %s1622_s3 }
 0xbef   :  { %v746_v25 = vpop.permute.xlu0 %745 }
 0xbf0   :  { %v748_v26 = vmul.f32 %v1578_v19, %v746_v25 }
 0xbf2   :  { %750 = vrot.lane.b32.xlu1 %v748_v26, %s1623_s13  ;;  %v1230_v26 = vld [vmem:[%s1891_s5] ss:$0 sm:$0xff] }
 0xc64   :  { %v751_v27 = vpop.permute.xlu1 %750 }
 0xc65   :  { %1420 = vmatmul.mubr.msk.f32.vlgmr.msra.gmra.mrb[8].mxu0 %vm350_vm10, %v751_v27 }
 0xc66   :  { %1529 = vmatpush3.bf16.msra.mxu0 %v1751_v50  ;;  %1441 = vmatprep.mubr.msk.f32.mxu0 %vm1620_vm8, %v1621_v54 }
 0xc67   :  { %1530 = vmatprep.subr.bf16.mxu0 %v1619_v47 }
 0xc6a   :  { %1532 = vmatpush3.bf16.msra.mxu0 %v1761_v53 }
 0xd38   :  { %v820_v28 = vpop.f32.mrb[8].mxu0 }
 0xd39   :  { %v824_v29 = vadd.f32 %v820_v28, %v1797_v10  ;;  %v1421_v30 = vpop.f32.mrb[9].mxu0 }
 0xd3a   :  { %v12_v30 = vstv %s1892_s6 }
 0xd3b   :  { %1581 = vtanh.f32 %v824_v29  ;;  %v1223_v32 = vmul.f32 -1.442695, %v824_v29  ;;  %13 = vst [vmem:[#allocation2] sm:$0x1] %v12_v30 }
 0xd3d   :  { %1583 = vpow2.f32 %v1223_v32 }
 0xd45   :  { %v1582_v31 = vpop.eup %1581 }
 0xd46   :  { %834 = vrot.lane.b32.xlu0 %v1582_v31, %s1622_s3 }
 0xd47   :  { %v1584_v33 = vpop.eup %1583 }
 0xd48   :  { %v828_v34 = vadd.f32 1.0, %v1584_v33 }
 0xd4a   :  { %1585 = vrcp.f32 %v828_v34 }
 0xd54   :  { %v1586_v35 = vpop.eup %1585 }
 0xd55   :  { %v832_v38 = vmul.f32 %v1586_v35, %v742_v24 }
 0xdb8   :  { %v835_v36 = vpop.permute.xlu0 %834 }
 0xdb9   :  { %v837_v37 = vmul.f32 %v1586_v35, %v835_v36 }
 0xdbb   :  { %839 = vrot.lane.b32.xlu1 %v837_v37, %s1623_s13  ;;  %v1231_v37 = vld [vmem:[#allocation2] ss:$0 sm:$0xff] }
 0xe2d   :  { %v840_v39 = vpop.permute.xlu1 %839 }
 0xe2e   :  { %v842_v40 = vadd.f32 %v840_v39, %v832_v38 }
 0xe30   :  { %1587 = vtanh.f32 %v842_v40 }
 0xe3a   :  { %v1588_v10 = vpop.eup %1587 }
 0xe3b   :  { %845 = vrot.lane.b32.xlu0 %v1588_v10, %s1622_s3 }
 0xead   :  { %v846_v41 = vpop.permute.xlu0 %845 }
 0xeae   :  { %v848_v42 = vmul.f32 %v1586_v35, %v846_v41 }
 0xeb0   :  { %850 = vrot.lane.b32.xlu1 %v848_v42, %s1623_s13 }
 0xf22   :  { %v851_v43 = vpop.permute.xlu1 %850 }
 0xf23   :  { %1431 = vmatmul.mubr.msk.f32.vlgmr.msra.gmra.mrb[16].mxu1 %vm350_vm10, %v851_v43 }
 0xf24   :  { %1535 = vmatpush3.bf16.msra.mxu1 %v1751_v50  ;;  %1452 = vmatprep.mubr.msk.f32.mxu1 %vm1620_vm8, %v1621_v54 }
 0xf25   :  { %1536 = vmatprep.subr.bf16.mxu1 %v1619_v47 }
 0xf28   :  { %1538 = vmatpush3.bf16.msra.mxu1 %v1761_v53 }
 0xff6   :  { %v920_v44 = vpop.f32.mrb[16].mxu1 }
 0xff7   :  { %v924_v45 = vadd.f32 %v920_v44, %v1795_v8  ;;  %v1432_v46 = vpop.f32.mrb[17].mxu1 }
 0xff9   :  { %1589 = vtanh.f32 %v924_v45  ;;  %v1225_v49 = vmul.f32 -1.442695, %v924_v45 }
 0xffb   :  { %1591 = vpow2.f32 %v1225_v49 }
0x1003   :  { %v1590_v48 = vpop.eup %1589 }
0x1004   :  { %934 = vrot.lane.b32.xlu0 %v1590_v48, %s1622_s3 }
0x1005   :  { %v1592_v51 = vpop.eup %1591 }
0x1006   :  { %v928_v52 = vadd.f32 1.0, %v1592_v51 }
0x1008   :  { %1593 = vrcp.f32 %v928_v52 }
0x1012   :  { %v1594_v50 = vpop.eup %1593 }
0x1013   :  { %v932_v47 = vmul.f32 %v1594_v50, %v842_v40 }
0x1076   :  { %v935_v55 = vpop.permute.xlu0 %934 }
0x1077   :  { %v937_v54 = vmul.f32 %v1594_v50, %v935_v55 }
0x1079   :  { %939 = vrot.lane.b32.xlu1 %v937_v54, %s1623_s13 }
0x10eb   :  { %v940_v53 = vpop.permute.xlu1 %939 }
0x10ec   :  { %v942_v56 = vadd.f32 %v940_v53, %v932_v47 }
0x10ee   :  { %1595 = vtanh.f32 %v942_v56 }
0x10f8   :  { %v1596_v8 = vpop.eup %1595 }
0x10f9   :  { %945 = vrot.lane.b32.xlu0 %v1596_v8, %s1622_s3 }
0x116b   :  { %v946_v57 = vpop.permute.xlu0 %945 }
0x116c   :  { %v948_v58 = vmul.f32 %v1594_v50, %v946_v57 }
0x116e   :  { %950 = vrot.lane.b32.xlu1 %v948_v58, %s1623_s13 }
0x11e0   :  { %v951_v59 = vpop.permute.xlu1 %950 }
0x11e1   :  { %1442 = vmatmul.mubr.msk.f32.vlgmr.msra.gmra.mrb[10].mxu0 %vm350_vm10, %v951_v59 }
0x12b4   :  { %v1020_v60 = vpop.f32.mrb[10].mxu0 }
0x12b5   :  { %v1024_v61 = vadd.f32 %v1020_v60, %v1801_v14  ;;  %v1443_v62 = vpop.f32.mrb[11].mxu0 }
0x12b7   :  { %1597 = vtanh.f32 %v1024_v61  ;;  %v1227_v0 = vmul.f32 -1.442695, %v1024_v61 }
0x12b9   :  { %1599 = vpow2.f32 %v1227_v0 }
0x12c1   :  { %v1598_v63 = vpop.eup %1597 }
0x12c2   :  { %1034 = vrot.lane.b32.xlu0 %v1598_v63, %s1622_s3 }
0x12c3   :  { %v1600_v1 = vpop.eup %1599 }
0x12c4   :  { %v1028_v2 = vadd.f32 1.0, %v1600_v1 }
0x12c6   :  { %1601 = vrcp.f32 %v1028_v2 }
0x12d0   :  { %v1602_v3 = vpop.eup %1601 }
0x12d1   :  { %v1032_v7 = vmul.f32 %v1602_v3, %v942_v56 }
0x1334   :  { %v1035_v5 = vpop.permute.xlu0 %1034 }
0x1335   :  { %v1037_v6 = vmul.f32 %v1602_v3, %v1035_v5 }
0x1337   :  { %1039 = vrot.lane.b32.xlu1 %v1037_v6, %s1623_s13 }
0x13a9   :  { %v1040_v9 = vpop.permute.xlu1 %1039 }
0x13aa   :  { %v1042_v11 = vadd.f32 %v1040_v9, %v1032_v7 }
0x13ac   :  { %1603 = vtanh.f32 %v1042_v11 }
0x13b6   :  { %v1604_v14 = vpop.eup %1603 }
0x13b7   :  { %1045 = vrot.lane.b32.xlu0 %v1604_v14, %s1622_s3 }
0x1429   :  { %v1046_v13 = vpop.permute.xlu0 %1045 }
0x142a   :  { %v1048_v15 = vmul.f32 %v1602_v3, %v1046_v13 }
0x142c   :  { %1050 = vrot.lane.b32.xlu1 %v1048_v15, %s1623_s13 }
0x149e   :  { %v1051_v16 = vpop.permute.xlu1 %1050 }
0x149f   :  { %1453 = vmatmul.mubr.msk.f32.vlgmr.msra.gmra.mrb[18].mxu1 %vm350_vm10, %v1051_v16 }
0x1572   :  { %v1120_v17 = vpop.f32.mrb[18].mxu1 }
0x1573   :  { %v1124_v18 = vadd.f32 %v1120_v17, %v1799_v12  ;;  %v1454_v19 = vpop.f32.mrb[19].mxu1 }
0x1575   :  { %1605 = vtanh.f32 %v1124_v18  ;;  %v1229_v21 = vmul.f32 -1.442695, %v1124_v18 }
0x1577   :  { %1607 = vpow2.f32 %v1229_v21 }
0x157f   :  { %v1606_v20 = vpop.eup %1605 }
0x1580   :  { %1134 = vrot.lane.b32.xlu0 %v1606_v20, %s1622_s3 }
0x1581   :  { %v1608_v22 = vpop.eup %1607 }
0x1582   :  { %v1128_v23 = vadd.f32 1.0, %v1608_v22 }
0x1584   :  { %1609 = vrcp.f32 %v1128_v23 }
0x158e   :  { %v1610_v24 = vpop.eup %1609 }
0x158f   :  { %v1132_v12 = vmul.f32 %v1610_v24, %v1042_v11 }
0x15f2   :  { %v1135_v4 = vpop.permute.xlu0 %1134 }
0x15f3   :  { %v1137_v25 = vmul.f32 %v1610_v24, %v1135_v4 }
0x15f5   :  { %1139 = vrot.lane.b32.xlu1 %v1137_v25, %s1623_s13 }
0x15f9   :  { %1155 = vrot.lane.b32.xlu1 %v1230_v26, %s1624_s0 }
0x1667   :  { %v1140_v27 = vpop.permute.xlu1 %1139 }
0x1668   :  { %v1142_v28 = vadd.f32 %v1140_v27, %v1132_v12 }
0x166a   :  { %1611 = vtanh.f32 %v1142_v28 }
0x166b   :  { %v1156_v32 = vpop.permute.xlu1 %1155 }
0x1674   :  { %v1612_v29 = vpop.eup %1611 }
0x1675   :  { %1145 = vrot.lane.b32.xlu0 %v1612_v29, %s1622_s3 }
0x16e7   :  { %v1146_v31 = vpop.permute.xlu0 %1145 }
0x16e8   :  { %v1148_v33 = vmul.f32 %v1610_v24, %v1146_v31 }
0x16ea   :  { %v1158_v34 = vmul.f32 %v1156_v32, %v1148_v33 }
0x16ec   :  { %1160 = vrot.lane.b32.xlu0 %v1158_v34, %s1623_s13 }
0x175e   :  { %v1161_v35 = vpop.permute.xlu0 %1160 }
0x175f   :  { %v1163_v36 = vsel %vm350_vm10, %v1161_v35, 0.0 }
0x1760   :  { %1164 = vadd.xlane.f32.xlu1 %v1163_v36 }
0x17ed   :  { %v1165_v38 = vpop.xlane.xlu1 %1164 }
0x17ee   :  { %v1173_v39 = vadd.f32 %v1231_v37, %v1165_v38 }
0x17f0   :  { %v1232_v40 = vmul.f32 -1.442695, %v1173_v39 }
0x17f2   :  { %1613 = vpow2.f32 %v1232_v40 }
0x17fc   :  { %v1614_v10 = vpop.eup %1613 }
0x17fd   :  { %v1177_v41 = vadd.f32 1.0, %v1614_v10 }
0x17ff   :  { %1615 = vrcp.f32 %v1177_v41 }
0x1809   :  { %v1616_v42 = vpop.eup %1615 }
0x180a   :  { %1182 = vperm.xlu0 %1547, %v1616_v42  }
0x1889   :  { %v1183_v43 = vpop.permute.xlu0 %1182 }
0x188a   :  { %1185 = vst [vmem:[%s1893_s7] sm:$0xff] %v1183_v43 }

</bundles_post_ra>
